<compile_context>
chip_gen: v7x
topology: tpu7x:2x2x1
jax: 0.10.0
libtpu: 0.0.40
codegen_flags: <defaults>
</compile_context>

<pallas_src>
import functools
import math

import jax
import jax.numpy as jnp
from jax.experimental import pallas as pl
from jax.experimental.pallas import tpu as pltpu


# ---------------------------------------------------------------------------
# Kernel A: input RMSNorm + per-head Q/K/V projection + RoPE + causal softmax
# attention context.  Grid = (batch, head); both axes are independent.
# ---------------------------------------------------------------------------
def _attn_head_kernel(x_ref, ln1_ref, cos_ref, sin_ref,
                      wq_ref, wk_ref, wv_ref, ctx_ref,
                      *, eps, sm_scale):
    f32 = jnp.float32
    bf16 = jnp.bfloat16

    x = x_ref[0].astype(f32)                                # (S, H)
    S = x.shape[0]

    # ---- input RMSNorm (fp32, recomputed per head: negligible vs matmuls) ----
    var = jnp.mean(x * x, axis=-1, keepdims=True)
    xn = (x * jax.lax.rsqrt(var + eps) * ln1_ref[...].astype(f32)).astype(bf16)

    # ---- per-head projections: bf16 x bf16 -> f32 on the MXU ----
    q = jnp.dot(xn, wq_ref[0], preferred_element_type=f32)  # (S, hd)
    k = jnp.dot(xn, wk_ref[0], preferred_element_type=f32)
    v = jnp.dot(xn, wv_ref[0], preferred_element_type=f32)

    # ---- rotary embedding in f32 on half-width cos/sin ----
    cos = cos_ref[0]                                        # (S, half)
    sin = sin_ref[0]
    half = cos.shape[-1]

    def rope(t):                                            # (S, hd) f32
        t1 = t[:, :half]
        t2 = t[:, half:]
        return jnp.concatenate(
            [t1 * cos - t2 * sin, t2 * cos + t1 * sin], axis=-1)

    qr = (rope(q) * sm_scale).astype(bf16)
    kr = rope(k).astype(bf16)

    # ---- scores + in-kernel causal mask + softmax ----
    scores = jax.lax.dot_general(
        qr, kr, (((1,), (1,)), ((), ())), preferred_element_type=f32)   # (S, S)
    row = jax.lax.broadcasted_iota(jnp.int32, (S, S), 0)
    col = jax.lax.broadcasted_iota(jnp.int32, (S, S), 1)
    scores = jnp.where(row >= col, scores, jnp.finfo(jnp.float32).min)

    scores = scores - jnp.max(scores, axis=-1, keepdims=True)
    p = jnp.exp(scores)
    p = p * pl.reciprocal(jnp.sum(p, axis=-1, keepdims=True), approx=True)
    # TODO(synk): attention dropout (training only) is not implemented.

    ctx = jnp.dot(p.astype(bf16), v.astype(bf16), preferred_element_type=f32)
    ctx_ref[0, 0] = ctx.astype(ctx_ref.dtype)               # (S, hd) bf16


# ---------------------------------------------------------------------------
# Kernel B: fused o_proj + scaled residual + post-attn RMSNorm + SwiGLU MLP
# tiled over the intermediate dimension.  Grid = (batch, I-tile).
# ---------------------------------------------------------------------------
def _oproj_mlp_kernel(ctx_ref, x_ref, ln2_ref, wo_ref, wg_ref, wu_ref, wd_ref,
                      out_ref, h1_ref, hn_ref, acc_ref,
                      *, eps, residual_scale):
    f32 = jnp.float32
    bf16 = jnp.bfloat16
    j = pl.program_id(1)

    @pl.when(j == 0)
    def _():
        # single lane-dense, full-K o_proj (no per-head decomposition)
        attn = jnp.dot(ctx_ref[0], wo_ref[...], preferred_element_type=f32)
        h1 = x_ref[0].astype(f32) + attn * residual_scale
        h1_ref[...] = h1
        var = jnp.mean(h1 * h1, axis=-1, keepdims=True)
        hn_ref[...] = h1 * jax.lax.rsqrt(var + eps) * ln2_ref[...].astype(f32)
        acc_ref[...] = jnp.zeros_like(acc_ref)

    # one intermediate-dim tile of down(silu(gate(x)) * up(x)), accumulated
    hn = hn_ref[...].astype(bf16)
    g = jnp.dot(hn, wg_ref[...], preferred_element_type=f32)   # (S, It)
    u = jnp.dot(hn, wu_ref[...], preferred_element_type=f32)
    m = (jax.nn.silu(g) * u).astype(bf16)
    acc_ref[...] += jnp.dot(m, wd_ref[...], preferred_element_type=f32)

    @pl.when(j == pl.num_programs(1) - 1)
    def _():
        out_ref[0] = (h1_ref[...] + acc_ref[...] * residual_scale
                      ).astype(out_ref.dtype)


@functools.partial(
    jax.jit,
    static_argnames=("num_heads", "head_dim", "eps", "residual_scale", "i_tile"))
def _decoder_layer_call(x, position_ids, inv_freq, ln1, ln2,
                        wq_h, wk_h, wv_h, wo, wg, wu, wd,
                        *, num_heads, head_dim, eps, residual_scale, i_tile):
    B, S, H = x.shape
    inter = wg.shape[1]
    half = head_dim // 2
    n_i = inter // i_tile
    sm_scale = 1.0 / math.sqrt(head_dim)

    # RoPE cos/sin "cache" (mirrors MiniCPMRotaryEmbedding + position_ids
    # lookup) at half width; tiny compared with the matmuls.
    freqs = position_ids.astype(jnp.float32)[..., None] * inv_freq[None, None, :]
    cos = jnp.cos(freqs)                                    # (B, S, half)
    sin = jnp.sin(freqs)

    # ---- kernel A: per-(batch, head) attention context ----
    attn_kernel = functools.partial(_attn_head_kernel, eps=eps, sm_scale=sm_scale)
    ctx = pl.pallas_call(
        attn_kernel,
        out_shape=jax.ShapeDtypeStruct((B, num_heads, S, head_dim), jnp.bfloat16),
        grid_spec=pltpu.PrefetchScalarGridSpec(
            num_scalar_prefetch=0,
            grid=(B, num_heads),
            in_specs=[
                pl.BlockSpec((1, S, H), lambda b, h: (b, 0, 0)),         # x
                pl.BlockSpec((1, H), lambda b, h: (0, 0)),               # ln1
                pl.BlockSpec((1, S, half), lambda b, h: (b, 0, 0)),      # cos
                pl.BlockSpec((1, S, half), lambda b, h: (b, 0, 0)),      # sin
                pl.BlockSpec((1, H, head_dim), lambda b, h: (h, 0, 0)),  # Wq[h]
                pl.BlockSpec((1, H, head_dim), lambda b, h: (h, 0, 0)),  # Wk[h]
                pl.BlockSpec((1, H, head_dim), lambda b, h: (h, 0, 0)),  # Wv[h]
            ],
            out_specs=pl.BlockSpec((1, 1, S, head_dim),
                                   lambda b, h: (b, h, 0, 0)),
        ),
        compiler_params=pltpu.CompilerParams(
            dimension_semantics=("parallel", "parallel")),
    )(x, ln1, cos, sin, wq_h, wk_h, wv_h)

    # Layout plumbing only (no compute): present a lane-dense (B,S,H) slab so
    # the o_proj in kernel B is a single full-K matmul.
    ctx2d = ctx.transpose(0, 2, 1, 3).reshape(B, S, H)

    # ---- kernel B: o_proj + residual + post-attn RMSNorm + I-tiled MLP ----
    mlp_kernel = functools.partial(_oproj_mlp_kernel, eps=eps,
                                   residual_scale=residual_scale)
    out = pl.pallas_call(
        mlp_kernel,
        out_shape=jax.ShapeDtypeStruct((B, S, H), x.dtype),
        grid_spec=pltpu.PrefetchScalarGridSpec(
            num_scalar_prefetch=0,
            grid=(B, n_i),
            in_specs=[
                pl.BlockSpec((1, S, H), lambda b, j: (b, 0, 0)),    # attn context
                pl.BlockSpec((1, S, H), lambda b, j: (b, 0, 0)),    # residual x
                pl.BlockSpec((1, H), lambda b, j: (0, 0)),          # ln2
                pl.BlockSpec((H, H), lambda b, j: (0, 0)),          # Wo
                pl.BlockSpec((H, i_tile), lambda b, j: (0, j)),     # Wg tile
                pl.BlockSpec((H, i_tile), lambda b, j: (0, j)),     # Wu tile
                pl.BlockSpec((i_tile, H), lambda b, j: (j, 0)),     # Wd tile
            ],
            out_specs=pl.BlockSpec((1, S, H), lambda b, j: (b, 0, 0)),
            scratch_shapes=[
                pltpu.VMEM((S, H), jnp.float32),    # h1 (attn residual)
                pltpu.VMEM((S, H), jnp.float32),    # post-attn norm
                pltpu.VMEM((S, H), jnp.float32),    # MLP accumulator
            ],
        ),
        compiler_params=pltpu.CompilerParams(
            dimension_semantics=("parallel", "arbitrary")),
    )(ctx2d, x, ln2, wo, wg, wu, wd)
    return out


class MiniCPMDecoderLayerPallas:
    """JAX/Pallas port of MiniCPMDecoderLayer (inference prefill forward)."""

    def __init__(self, *, hidden_size, num_attention_heads, intermediate_size,
                 num_hidden_layers, scale_depth, rope_theta=10000.0,
                 max_position_embeddings=2048, rms_norm_eps=1e-6,
                 intermediate_tile=None, key=None):
        assert hidden_size % num_attention_heads == 0
        self.hidden_size = hidden_size
        self.num_heads = num_attention_heads
        self.head_dim = hidden_size // num_attention_heads
        self.intermediate_size = intermediate_size
        self.max_position_embeddings = max_position_embeddings
        self.eps = float(rms_norm_eps)
        self.residual_scale = float(scale_depth / math.sqrt(num_hidden_layers))

        if intermediate_tile is None:
            intermediate_tile = (intermediate_size
                                 if intermediate_size % 128
                                 else min(intermediate_size, 512))
        assert intermediate_size % intermediate_tile == 0
        assert intermediate_tile % 128 == 0 or intermediate_tile == intermediate_size
        self.i_tile = int(intermediate_tile)

        # inv_freq = 1 / theta^(arange(0, hd, 2)/hd)
        self.inv_freq = 1.0 / (rope_theta ** (
            jnp.arange(0, self.head_dim, 2, dtype=jnp.float32) / self.head_dim))

        H, I = hidden_size, intermediate_size
        nh, hd = self.num_heads, self.head_dim
        ks = jax.random.split(key, 9)

        def init(k, shape, fan_in):
            w = jax.random.normal(k, shape, dtype=jnp.float32) / math.sqrt(fan_in)
            return w.astype(jnp.bfloat16)          # weights stored bf16

        # Weights stored (in, out): forward computes x @ W (== torch Linear).
        self.wq = init(ks[0], (H, H), H)
        self.wk = init(ks[1], (H, H), H)
        self.wv = init(ks[2], (H, H), H)
        self.wo = init(ks[3], (H, H), H)
        self.wg = init(ks[4], (H, I), H)
        self.wu = init(ks[5], (H, I), H)
        self.wd = init(ks[6], (I, H), I)
        self.ln1 = (1.0 + 0.1 * jax.random.normal(ks[7], (H,), dtype=jnp.float32)
                    ).reshape(1, H)
        self.ln2 = (1.0 + 0.1 * jax.random.normal(ks[8], (H,), dtype=jnp.float32)
                    ).reshape(1, H)
        # Per-head weight layout (nh, H, hd) so kernel A can stream one head's
        # columns per grid step without sub-128-lane BlockSpec slices.
        self.wq_h = self.wq.reshape(H, nh, hd).transpose(1, 0, 2)
        self.wk_h = self.wk.reshape(H, nh, hd).transpose(1, 0, 2)
        self.wv_h = self.wv.reshape(H, nh, hd).transpose(1, 0, 2)

    def __call__(self, hidden_states, attention_mask=None, position_ids=None):
        B, S, _ = hidden_states.shape
        if position_ids is None:
            position_ids = jnp.broadcast_to(
                jnp.arange(S, dtype=jnp.int32)[None, :], (B, S))
        # TODO(synk): only the causal prefill mask (generated in-kernel) is
        # supported; arbitrary/padding attention_mask, past_key_value,
        # use_cache and output_attentions are not implemented.
        out = _decoder_layer_call(
            hidden_states, position_ids, self.inv_freq, self.ln1, self.ln2,
            self.wq_h, self.wk_h, self.wv_h, self.wo,
            self.wg, self.wu, self.wd,
            num_heads=self.num_heads, head_dim=self.head_dim,
            eps=self.eps, residual_scale=self.residual_scale,
            i_tile=self.i_tile)
        return (out,)


def _reference_forward(layer, x, position_ids):
    """Plain-JAX mirror of the torch MiniCPMDecoderLayer forward (f32 math)."""
    f32 = jnp.float32
    B, S, H = x.shape
    nh, hd = layer.num_heads, layer.head_dim
    eps, rs = layer.eps, layer.residual_scale
    wq, wk, wv, wo = (w.astype(f32) for w in (layer.wq, layer.wk, layer.wv, layer.wo))
    wg, wu, wd = (w.astype(f32) for w in (layer.wg, layer.wu, layer.wd))

    def rms(h, w):
        v = jnp.mean(h * h, axis=-1, keepdims=True)
        return h * jax.lax.rsqrt(v + eps) * w.reshape(-1)

    xf = x.astype(f32)
    xn = rms(xf, layer.ln1)
    q = (xn @ wq).reshape(B, S, nh, hd).transpose(0, 2, 1, 3)
    k = (xn @ wk).reshape(B, S, nh, hd).transpose(0, 2, 1, 3)
    v = (xn @ wv).reshape(B, S, nh, hd).transpose(0, 2, 1, 3)

    t = jnp.arange(layer.max_position_embeddings, dtype=f32)
    freqs = jnp.outer(t, layer.inv_freq)
    emb = jnp.concatenate([freqs, freqs], axis=-1)
    cos = jnp.cos(emb)[position_ids][:, None]       # (B,1,S,hd)
    sin = jnp.sin(emb)[position_ids][:, None]

    def rot_half(a):
        return jnp.concatenate([-a[..., hd // 2:], a[..., :hd // 2]], axis=-1)

    q = q * cos + rot_half(q) * sin
    k = k * cos + rot_half(k) * sin

    scores = jnp.einsum("bhqd,bhkd->bhqk", q, k) / math.sqrt(hd)
    causal = jnp.where(jnp.arange(S)[:, None] >= jnp.arange(S)[None, :],
                       0.0, jnp.finfo(f32).min)
    scores = scores + causal[None, None]
    p = jax.nn.softmax(scores, axis=-1)
    o = jnp.einsum("bhqk,bhkd->bhqd", p, v)
    o = o.transpose(0, 2, 1, 3).reshape(B, S, H) @ wo

    h1 = xf + o * rs
    hn = rms(h1, layer.ln2)
    mlp = (jax.nn.silu(hn @ wg) * (hn @ wu)) @ wd
    return h1 + mlp * rs


if __name__ == "__main__":
    # Small shapes consistent with the module: batch=2, seq=8, hidden=32,
    # heads=4 (head_dim=8), intermediate=256 (tiled 2 x 128), layers=8.
    B, S, H = 2, 8, 32
    NH, INTER = 4, 256

    root = jax.random.PRNGKey(0)
    k_w, k_x = jax.random.split(root)

    layer = MiniCPMDecoderLayerPallas(
        hidden_size=H, num_attention_heads=NH, intermediate_size=INTER,
        num_hidden_layers=8, scale_depth=1.4, rope_theta=10000.0,
        max_position_embeddings=64, rms_norm_eps=1e-6,
        intermediate_tile=128, key=k_w)

    x = jax.random.normal(k_x, (B, S, H), dtype=jnp.float32)
    position_ids = jnp.broadcast_to(
        jnp.arange(S, dtype=jnp.int32)[None, :], (B, S))

    (out,) = layer(x, position_ids=position_ids)
    out = jax.block_until_ready(out)

    ref = jax.block_until_ready(_reference_forward(layer, x, position_ids))

    assert out.shape == (B, S, H) and out.dtype == x.dtype
    rel = float(jnp.linalg.norm(out - ref) / jnp.linalg.norm(ref))
    max_abs = float(jnp.max(jnp.abs(out - ref)))
    # bf16 MXU operands vs f32 reference -> ~1e-2-level agreement expected.
    assert rel < 3e-2, f"relative L2 error vs reference: {rel} (max abs {max_abs})"

    print("KERNEL_OK")
</pallas_src>

<mosaic_0001>
module attributes {stable_mosaic.version = 11 : i64} {
  func.func @_attn_head_kernel(%arg0: i32, %arg1: i32, %arg2: memref<1x8x32xf32, #tpu.memory_space<vmem>>, %arg3: memref<1x32xf32, #tpu.memory_space<vmem>>, %arg4: memref<1x8x4xf32, #tpu.memory_space<vmem>>, %arg5: memref<1x8x4xf32, #tpu.memory_space<vmem>>, %arg6: memref<1x32x8xbf16, #tpu.memory_space<vmem>>, %arg7: memref<1x32x8xbf16, #tpu.memory_space<vmem>>, %arg8: memref<1x32x8xbf16, #tpu.memory_space<vmem>>, %arg9: memref<1x1x8x8xbf16, #tpu.memory_space<vmem>>) attributes {dimension_semantics = [#tpu.dimension_semantics<parallel>, #tpu.dimension_semantics<parallel>], iteration_bounds = array<i64: 2, 4>, scalar_prefetch = 0 : i64, scratch_operands = 0 : i64, tpu.core_type = #tpu.core_type<tc>, window_params = [{transform_indices = @transform_0, window_bounds = array<i64: 1, 8, 32>}, {pipeline_mode = #tpu.pipeline_mode<synchronous>, transform_indices = @transform_1, window_bounds = array<i64: 1, 32>}, {transform_indices = @transform_2, window_bounds = array<i64: 1, 8, 4>}, {transform_indices = @transform_3, window_bounds = array<i64: 1, 8, 4>}, {transform_indices = @transform_4, window_bounds = array<i64: 1, 32, 8>}, {transform_indices = @transform_5, window_bounds = array<i64: 1, 32, 8>}, {transform_indices = @transform_6, window_bounds = array<i64: 1, 32, 8>}, {transform_indices = @transform_7, window_bounds = array<i64: 1, 1, 8, 8>}]} {
    %c0 = arith.constant 0 : index
    %c0_0 = arith.constant 0 : index
    %c0_1 = arith.constant 0 : index
    %0 = vector.load %arg2[%c0, %c0_0, %c0_1] : memref<1x8x32xf32, #tpu.memory_space<vmem>>, vector<1x8x32xf32>
    %1 = vector.shape_cast %0 : vector<1x8x32xf32> to vector<8x32xf32>
    %2 = arith.mulf %1, %1 : vector<8x32xf32>
    %cst = arith.constant dense<0.000000e+00> : vector<8xf32>
    %3 = vector.multi_reduction <add>, %2, %cst [1] : vector<8x32xf32> to vector<8xf32>
    %4 = vector.shape_cast %3 : vector<8xf32> to vector<8x1xf32>
    %cst_2 = arith.constant 3.200000e+01 : f32
    %5 = vector.broadcast %cst_2 : f32 to vector<8x1xf32>
    %6 = arith.divf %4, %5 : vector<8x1xf32>
    %cst_3 = arith.constant 9.99999997E-7 : f32
    %7 = vector.broadcast %cst_3 : f32 to vector<8x1xf32>
    %8 = arith.addf %6, %7 : vector<8x1xf32>
    %9 = math.rsqrt %8 : vector<8x1xf32>
    %10 = vector.broadcast %9 : vector<8x1xf32> to vector<8x32xf32>
    %11 = arith.mulf %1, %10 : vector<8x32xf32>
    %c0_4 = arith.constant 0 : index
    %c0_5 = arith.constant 0 : index
    %12 = vector.load %arg3[%c0_4, %c0_5] : memref<1x32xf32, #tpu.memory_space<vmem>>, vector<1x32xf32>
    %13 = vector.broadcast %12 : vector<1x32xf32> to vector<8x32xf32>
    %14 = arith.mulf %11, %13 : vector<8x32xf32>
    %15 = arith.truncf %14 : vector<8x32xf32> to vector<8x32xbf16>
    %c0_6 = arith.constant 0 : index
    %c0_7 = arith.constant 0 : index
    %c0_8 = arith.constant 0 : index
    %16 = vector.load %arg6[%c0_6, %c0_7, %c0_8] : memref<1x32x8xbf16, #tpu.memory_space<vmem>>, vector<1x32x8xbf16>
    %17 = vector.shape_cast %16 : vector<1x32x8xbf16> to vector<32x8xbf16>
    %cst_9 = arith.constant dense<0.000000e+00> : vector<8x8xf32>
    %18 = tpu.matmul %15, %17, %cst_9 {dimension_numbers = #tpu.dot_dimension_numbers<[1], [0], [0], [1], [0, 0, 1, 1], [], []>} : vector<8x32xbf16>, vector<32x8xbf16>, vector<8x8xf32> -> vector<8x8xf32>
    %c0_10 = arith.constant 0 : index
    %c0_11 = arith.constant 0 : index
    %c0_12 = arith.constant 0 : index
    %19 = vector.load %arg7[%c0_10, %c0_11, %c0_12] : memref<1x32x8xbf16, #tpu.memory_space<vmem>>, vector<1x32x8xbf16>
    %20 = vector.shape_cast %19 : vector<1x32x8xbf16> to vector<32x8xbf16>
    %cst_13 = arith.constant dense<0.000000e+00> : vector<8x8xf32>
    %21 = tpu.matmul %15, %20, %cst_13 {dimension_numbers = #tpu.dot_dimension_numbers<[1], [0], [0], [1], [0, 0, 1, 1], [], []>} : vector<8x32xbf16>, vector<32x8xbf16>, vector<8x8xf32> -> vector<8x8xf32>
    %c0_14 = arith.constant 0 : index
    %c0_15 = arith.constant 0 : index
    %c0_16 = arith.constant 0 : index
    %22 = vector.load %arg8[%c0_14, %c0_15, %c0_16] : memref<1x32x8xbf16, #tpu.memory_space<vmem>>, vector<1x32x8xbf16>
    %23 = vector.shape_cast %22 : vector<1x32x8xbf16> to vector<32x8xbf16>
    %cst_17 = arith.constant dense<0.000000e+00> : vector<8x8xf32>
    %24 = tpu.matmul %15, %23, %cst_17 {dimension_numbers = #tpu.dot_dimension_numbers<[1], [0], [0], [1], [0, 0, 1, 1], [], []>} : vector<8x32xbf16>, vector<32x8xbf16>, vector<8x8xf32> -> vector<8x8xf32>
    %c0_18 = arith.constant 0 : index
    %c0_19 = arith.constant 0 : index
    %c0_20 = arith.constant 0 : index
    %25 = vector.load %arg4[%c0_18, %c0_19, %c0_20] : memref<1x8x4xf32, #tpu.memory_space<vmem>>, vector<1x8x4xf32>
    %26 = vector.shape_cast %25 : vector<1x8x4xf32> to vector<8x4xf32>
    %c0_21 = arith.constant 0 : index
    %c0_22 = arith.constant 0 : index
    %c0_23 = arith.constant 0 : index
    %27 = vector.load %arg5[%c0_21, %c0_22, %c0_23] : memref<1x8x4xf32, #tpu.memory_space<vmem>>, vector<1x8x4xf32>
    %28 = vector.shape_cast %27 : vector<1x8x4xf32> to vector<8x4xf32>
    %29 = vector.extract_strided_slice %18 {offsets = [0, 0], sizes = [8, 4], strides = [1, 1]} : vector<8x8xf32> to vector<8x4xf32>
    %30 = vector.extract_strided_slice %18 {offsets = [0, 4], sizes = [8, 4], strides = [1, 1]} : vector<8x8xf32> to vector<8x4xf32>
    %31 = arith.mulf %29, %26 : vector<8x4xf32>
    %32 = arith.mulf %30, %28 : vector<8x4xf32>
    %33 = arith.subf %31, %32 : vector<8x4xf32>
    %34 = arith.mulf %30, %26 : vector<8x4xf32>
    %35 = arith.mulf %29, %28 : vector<8x4xf32>
    %36 = arith.addf %34, %35 : vector<8x4xf32>
    %37 = tpu.concatenate %33, %36 in 1 : vector<8x4xf32>, vector<8x4xf32> -> vector<8x8xf32>
    %cst_24 = arith.constant 0.353553385 : f32
    %38 = vector.broadcast %cst_24 : f32 to vector<8x8xf32>
    %39 = arith.mulf %37, %38 : vector<8x8xf32>
    %40 = arith.truncf %39 : vector<8x8xf32> to vector<8x8xbf16>
    %41 = vector.extract_strided_slice %21 {offsets = [0, 0], sizes = [8, 4], strides = [1, 1]} : vector<8x8xf32> to vector<8x4xf32>
    %42 = vector.extract_strided_slice %21 {offsets = [0, 4], sizes = [8, 4], strides = [1, 1]} : vector<8x8xf32> to vector<8x4xf32>
    %43 = arith.mulf %41, %26 : vector<8x4xf32>
    %44 = arith.mulf %42, %28 : vector<8x4xf32>
    %45 = arith.subf %43, %44 : vector<8x4xf32>
    %46 = arith.mulf %42, %26 : vector<8x4xf32>
    %47 = arith.mulf %41, %28 : vector<8x4xf32>
    %48 = arith.addf %46, %47 : vector<8x4xf32>
    %49 = tpu.concatenate %45, %48 in 1 : vector<8x4xf32>, vector<8x4xf32> -> vector<8x8xf32>
    %50 = arith.truncf %49 : vector<8x8xf32> to vector<8x8xbf16>
    %cst_25 = arith.constant dense<0.000000e+00> : vector<8x8xf32>
    %51 = tpu.matmul %40, %50, %cst_25 {dimension_numbers = #tpu.dot_dimension_numbers<[1], [1], [0], [0], [0, 0, 1, 0], [], []>} : vector<8x8xbf16>, vector<8x8xbf16>, vector<8x8xf32> -> vector<8x8xf32>
    %52 = tpu.iota {dimensions = array<i32: 0>} : vector<8x8xi32>
    %53 = tpu.iota {dimensions = array<i32: 1>} : vector<8x8xi32>
    %54 = arith.cmpi sge, %52, %53 : vector<8x8xi32>
    %cst_26 = arith.constant -3.40282347E+38 : f32
    %55 = vector.broadcast %cst_26 : f32 to vector<8x8xf32>
    %56 = arith.select %54, %51, %55 : vector<8x8xi1>, vector<8x8xf32>
    %cst_27 = arith.constant dense<0xFF800000> : vector<8xf32>
    %57 = vector.multi_reduction <maximumf>, %56, %cst_27 [1] : vector<8x8xf32> to vector<8xf32>
    %58 = vector.shape_cast %57 : vector<8xf32> to vector<8x1xf32>
    %59 = vector.broadcast %58 : vector<8x1xf32> to vector<8x8xf32>
    %60 = arith.subf %56, %59 : vector<8x8xf32>
    %61 = math.exp %60 : vector<8x8xf32>
    %cst_28 = arith.constant dense<0.000000e+00> : vector<8xf32>
    %62 = vector.multi_reduction <add>, %61, %cst_28 [1] : vector<8x8xf32> to vector<8xf32>
    %63 = vector.shape_cast %62 : vector<8xf32> to vector<8x1xf32>
    %64 = tpu.reciprocal %63 {approx = true} : vector<8x1xf32> -> vector<8x1xf32>
    %65 = vector.broadcast %64 : vector<8x1xf32> to vector<8x8xf32>
    %66 = arith.mulf %61, %65 : vector<8x8xf32>
    %67 = arith.truncf %66 : vector<8x8xf32> to vector<8x8xbf16>
    %68 = arith.truncf %24 : vector<8x8xf32> to vector<8x8xbf16>
    %cst_29 = arith.constant dense<0.000000e+00> : vector<8x8xf32>
    %69 = tpu.matmul %67, %68, %cst_29 {dimension_numbers = #tpu.dot_dimension_numbers<[1], [0], [0], [1], [0, 0, 1, 1], [], []>} : vector<8x8xbf16>, vector<8x8xbf16>, vector<8x8xf32> -> vector<8x8xf32>
    %70 = arith.truncf %69 : vector<8x8xf32> to vector<8x8xbf16>
    %c0_30 = arith.constant 0 : index
    %c0_31 = arith.constant 0 : index
    %c0_32 = arith.constant 0 : index
    %c0_33 = arith.constant 0 : index
    %71 = vector.load %arg9[%c0_30, %c0_31, %c0_32, %c0_33] : memref<1x1x8x8xbf16, #tpu.memory_space<vmem>>, vector<1x1x8x8xbf16>
    %72 = vector.shape_cast %71 : vector<1x1x8x8xbf16> to vector<8x8xbf16>
    %73 = vector.shape_cast %70 : vector<8x8xbf16> to vector<1x1x8x8xbf16>
    tpu.vector_store %arg9[%c0_30, %c0_31, %c0_32, %c0_33], %73 {strides = array<i32>} : memref<1x1x8x8xbf16, #tpu.memory_space<vmem>>, vector<1x1x8x8xbf16>,
    return
  }
  func.func @transform_0(%arg0: i32, %arg1: i32) -> (i32, i32, i32) {
    %c0_i32 = arith.constant 0 : i32
    %c0_i32_0 = arith.constant 0 : i32
    %c0_i32_1 = arith.constant 0 : i32
    return %arg0, %c0_i32, %c0_i32_0 : i32, i32, i32
  }
  func.func @transform_1(%arg0: i32, %arg1: i32) -> (i32, i32) {
    %c0_i32 = arith.constant 0 : i32
    %c0_i32_0 = arith.constant 0 : i32
    %c0_i32_1 = arith.constant 0 : i32
    return %c0_i32, %c0_i32_0 : i32, i32
  }
  func.func @transform_2(%arg0: i32, %arg1: i32) -> (i32, i32, i32) {
    %c0_i32 = arith.constant 0 : i32
    %c0_i32_0 = arith.constant 0 : i32
    %c0_i32_1 = arith.constant 0 : i32
    return %arg0, %c0_i32, %c0_i32_0 : i32, i32, i32
  }
  func.func @transform_3(%arg0: i32, %arg1: i32) -> (i32, i32, i32) {
    %c0_i32 = arith.constant 0 : i32
    %c0_i32_0 = arith.constant 0 : i32
    %c0_i32_1 = arith.constant 0 : i32
    return %arg0, %c0_i32, %c0_i32_0 : i32, i32, i32
  }
  func.func @transform_4(%arg0: i32, %arg1: i32) -> (i32, i32, i32) {
    %c0_i32 = arith.constant 0 : i32
    %c0_i32_0 = arith.constant 0 : i32
    %c0_i32_1 = arith.constant 0 : i32
    return %arg1, %c0_i32, %c0_i32_0 : i32, i32, i32
  }
  func.func @transform_5(%arg0: i32, %arg1: i32) -> (i32, i32, i32) {
    %c0_i32 = arith.constant 0 : i32
    %c0_i32_0 = arith.constant 0 : i32
    %c0_i32_1 = arith.constant 0 : i32
    return %arg1, %c0_i32, %c0_i32_0 : i32, i32, i32
  }
  func.func @transform_6(%arg0: i32, %arg1: i32) -> (i32, i32, i32) {
    %c0_i32 = arith.constant 0 : i32
    %c0_i32_0 = arith.constant 0 : i32
    %c0_i32_1 = arith.constant 0 : i32
    return %arg1, %c0_i32, %c0_i32_0 : i32, i32, i32
  }
  func.func @transform_7(%arg0: i32, %arg1: i32) -> (i32, i32, i32, i32) {
    %c0_i32 = arith.constant 0 : i32
    %c0_i32_0 = arith.constant 0 : i32
    %c0_i32_1 = arith.constant 0 : i32
    return %arg0, %arg1, %c0_i32, %c0_i32_0 : i32, i32, i32, i32
  }
}

module attributes {stable_mosaic.version = 11 : i64} {
  func.func @_oproj_mlp_kernel(%arg0: i32, %arg1: i32, %arg2: memref<1x8x32xbf16, #tpu.memory_space<vmem>>, %arg3: memref<1x8x32xf32, #tpu.memory_space<vmem>>, %arg4: memref<1x32xf32, #tpu.memory_space<vmem>>, %arg5: memref<32x32xbf16, #tpu.memory_space<vmem>>, %arg6: memref<32x128xbf16, #tpu.memory_space<vmem>>, %arg7: memref<32x128xbf16, #tpu.memory_space<vmem>>, %arg8: memref<128x32xbf16, #tpu.memory_space<vmem>>, %arg9: memref<1x8x32xf32, #tpu.memory_space<vmem>>, %arg10: memref<8x32xf32, #tpu.memory_space<vmem>>, %arg11: memref<8x32xf32, #tpu.memory_space<vmem>>, %arg12: memref<8x32xf32, #tpu.memory_space<vmem>>) attributes {dimension_semantics = [#tpu.dimension_semantics<parallel>, #tpu.dimension_semantics<arbitrary>], iteration_bounds = array<i64: 2, 2>, scalar_prefetch = 0 : i64, scratch_operands = 3 : i64, tpu.core_type = #tpu.core_type<tc>, window_params = [{transform_indices = @transform_0, window_bounds = array<i64: 1, 8, 32>}, {transform_indices = @transform_1, window_bounds = array<i64: 1, 8, 32>}, {pipeline_mode = #tpu.pipeline_mode<synchronous>, transform_indices = @transform_2, window_bounds = array<i64: 1, 32>}, {pipeline_mode = #tpu.pipeline_mode<synchronous>, transform_indices = @transform_3, window_bounds = array<i64: 32, 32>}, {transform_indices = @transform_4, window_bounds = array<i64: 32, 128>}, {transform_indices = @transform_5, window_bounds = array<i64: 32, 128>}, {transform_indices = @transform_6, window_bounds = array<i64: 128, 32>}, {transform_indices = @transform_7, window_bounds = array<i64: 1, 8, 32>}]} {
    %c0_i32 = arith.constant 0 : i32
    %0 = arith.cmpi eq, %arg1, %c0_i32 : i32
    %1 = arith.extui %0 : i1 to i32
    %c0_i32_0 = arith.constant 0 : i32
    %2 = arith.cmpi ne, %1, %c0_i32_0 : i32
    scf.if %2 {
      %c0_16 = arith.constant 0 : index
      %c0_17 = arith.constant 0 : index
      %c0_18 = arith.constant 0 : index
      %25 = vector.load %arg2[%c0_16, %c0_17, %c0_18] : memref<1x8x32xbf16, #tpu.memory_space<vmem>>, vector<1x8x32xbf16>
      %26 = vector.shape_cast %25 : vector<1x8x32xbf16> to vector<8x32xbf16>
      %c0_19 = arith.constant 0 : index
      %c0_20 = arith.constant 0 : index
      %27 = vector.load %arg5[%c0_19, %c0_20] : memref<32x32xbf16, #tpu.memory_space<vmem>>, vector<32x32xbf16>
      %cst_21 = arith.constant dense<0.000000e+00> : vector<8x32xf32>
      %28 = tpu.matmul %26, %27, %cst_21 {dimension_numbers = #tpu.dot_dimension_numbers<[1], [0], [0], [1], [0, 0, 1, 1], [], []>} : vector<8x32xbf16>, vector<32x32xbf16>, vector<8x32xf32> -> vector<8x32xf32>
      %c0_22 = arith.constant 0 : index
      %c0_23 = arith.constant 0 : index
      %c0_24 = arith.constant 0 : index
      %29 = vector.load %arg3[%c0_22, %c0_23, %c0_24] : memref<1x8x32xf32, #tpu.memory_space<vmem>>, vector<1x8x32xf32>
      %30 = vector.shape_cast %29 : vector<1x8x32xf32> to vector<8x32xf32>
      %cst_25 = arith.constant 0.494974732 : f32
      %31 = vector.broadcast %cst_25 : f32 to vector<8x32xf32>
      %32 = arith.mulf %28, %31 : vector<8x32xf32>
      %33 = arith.addf %30, %32 : vector<8x32xf32>
      %c0_26 = arith.constant 0 : index
      %c0_27 = arith.constant 0 : index
      %34 = vector.load %arg10[%c0_26, %c0_27] : memref<8x32xf32, #tpu.memory_space<vmem>>, vector<8x32xf32>
      tpu.vector_store %arg10[%c0_26, %c0_27], %33 {strides = array<i32>} : memref<8x32xf32, #tpu.memory_space<vmem>>, vector<8x32xf32>,
      %35 = arith.mulf %33, %33 : vector<8x32xf32>
      %cst_28 = arith.constant dense<0.000000e+00> : vector<8xf32>
      %36 = vector.multi_reduction <add>, %35, %cst_28 [1] : vector<8x32xf32> to vector<8xf32>
      %37 = vector.shape_cast %36 : vector<8xf32> to vector<8x1xf32>
      %cst_29 = arith.constant 3.200000e+01 : f32
      %38 = vector.broadcast %cst_29 : f32 to vector<8x1xf32>
      %39 = arith.divf %37, %38 : vector<8x1xf32>
      %cst_30 = arith.constant 9.99999997E-7 : f32
      %40 = vector.broadcast %cst_30 : f32 to vector<8x1xf32>
      %41 = arith.addf %39, %40 : vector<8x1xf32>
      %42 = math.rsqrt %41 : vector<8x1xf32>
      %43 = vector.broadcast %42 : vector<8x1xf32> to vector<8x32xf32>
      %44 = arith.mulf %33, %43 : vector<8x32xf32>
      %c0_31 = arith.constant 0 : index
      %c0_32 = arith.constant 0 : index
      %45 = vector.load %arg4[%c0_31, %c0_32] : memref<1x32xf32, #tpu.memory_space<vmem>>, vector<1x32xf32>
      %46 = vector.broadcast %45 : vector<1x32xf32> to vector<8x32xf32>
      %47 = arith.mulf %44, %46 : vector<8x32xf32>
      %c0_33 = arith.constant 0 : index
      %c0_34 = arith.constant 0 : index
      %48 = vector.load %arg11[%c0_33, %c0_34] : memref<8x32xf32, #tpu.memory_space<vmem>>, vector<8x32xf32>
      tpu.vector_store %arg11[%c0_33, %c0_34], %47 {strides = array<i32>} : memref<8x32xf32, #tpu.memory_space<vmem>>, vector<8x32xf32>,
      %cst_35 = arith.constant 0.000000e+00 : f32
      %49 = vector.broadcast %cst_35 : f32 to vector<8x32xf32>
      %c0_36 = arith.constant 0 : index
      %c0_37 = arith.constant 0 : index
      %50 = vector.load %arg12[%c0_36, %c0_37] : memref<8x32xf32, #tpu.memory_space<vmem>>, vector<8x32xf32>
      tpu.vector_store %arg12[%c0_36, %c0_37], %49 {strides = array<i32>} : memref<8x32xf32, #tpu.memory_space<vmem>>, vector<8x32xf32>,
    } else {
    }
    %c0 = arith.constant 0 : index
    %c0_1 = arith.constant 0 : index
    %3 = vector.load %arg11[%c0, %c0_1] : memref<8x32xf32, #tpu.memory_space<vmem>>, vector<8x32xf32>
    %4 = arith.truncf %3 : vector<8x32xf32> to vector<8x32xbf16>
    %c0_2 = arith.constant 0 : index
    %c0_3 = arith.constant 0 : index
    %5 = vector.load %arg6[%c0_2, %c0_3] : memref<32x128xbf16, #tpu.memory_space<vmem>>, vector<32x128xbf16>
    %cst = arith.constant dense<0.000000e+00> : vector<8x128xf32>
    %6 = tpu.matmul %4, %5, %cst {dimension_numbers = #tpu.dot_dimension_numbers<[1], [0], [0], [1], [0, 0, 1, 1], [], []>} : vector<8x32xbf16>, vector<32x128xbf16>, vector<8x128xf32> -> vector<8x128xf32>
    %c0_4 = arith.constant 0 : index
    %c0_5 = arith.constant 0 : index
    %7 = vector.load %arg7[%c0_4, %c0_5] : memref<32x128xbf16, #tpu.memory_space<vmem>>, vector<32x128xbf16>
    %cst_6 = arith.constant dense<0.000000e+00> : vector<8x128xf32>
    %8 = tpu.matmul %4, %7, %cst_6 {dimension_numbers = #tpu.dot_dimension_numbers<[1], [0], [0], [1], [0, 0, 1, 1], [], []>} : vector<8x32xbf16>, vector<32x128xbf16>, vector<8x128xf32> -> vector<8x128xf32>
    %9 = arith.negf %6 : vector<8x128xf32>
    %10 = math.exp %9 : vector<8x128xf32>
    %cst_7 = arith.constant 1.000000e+00 : f32
    %11 = vector.broadcast %cst_7 : f32 to vector<8x128xf32>
    %12 = arith.addf %11, %10 : vector<8x128xf32>
    %13 = arith.divf %11, %12 : vector<8x128xf32>
    %14 = arith.mulf %6, %13 : vector<8x128xf32>
    %15 = arith.mulf %14, %8 : vector<8x128xf32>
    %16 = arith.truncf %15 : vector<8x128xf32> to vector<8x128xbf16>
    %c0_8 = arith.constant 0 : index
    %c0_9 = arith.constant 0 : index
    %17 = vector.load %arg12[%c0_8, %c0_9] : memref<8x32xf32, #tpu.memory_space<vmem>>, vector<8x32xf32>
    %c0_10 = arith.constant 0 : index
    %c0_11 = arith.constant 0 : index
    %18 = vector.load %arg8[%c0_10, %c0_11] : memref<128x32xbf16, #tpu.memory_space<vmem>>, vector<128x32xbf16>
    %cst_12 = arith.constant dense<0.000000e+00> : vector<8x32xf32>
    %19 = tpu.matmul %16, %18, %cst_12 {dimension_numbers = #tpu.dot_dimension_numbers<[1], [0], [0], [1], [0, 0, 1, 1], [], []>} : vector<8x128xbf16>, vector<128x32xbf16>, vector<8x32xf32> -> vector<8x32xf32>
    %20 = arith.addf %17, %19 : vector<8x32xf32>
    %c0_13 = arith.constant 0 : index
    %c0_14 = arith.constant 0 : index
    %21 = vector.load %arg12[%c0_13, %c0_14] : memref<8x32xf32, #tpu.memory_space<vmem>>, vector<8x32xf32>
    tpu.vector_store %arg12[%c0_13, %c0_14], %20 {strides = array<i32>} : memref<8x32xf32, #tpu.memory_space<vmem>>, vector<8x32xf32>,
    %c1_i32 = arith.constant 1 : i32
    %22 = arith.cmpi eq, %arg1, %c1_i32 : i32
    %23 = arith.extui %22 : i1 to i32
    %c0_i32_15 = arith.constant 0 : i32
    %24 = arith.cmpi ne, %23, %c0_i32_15 : i32
    scf.if %24 {
      %c0_16 = arith.constant 0 : index
      %c0_17 = arith.constant 0 : index
      %25 = vector.load %arg10[%c0_16, %c0_17] : memref<8x32xf32, #tpu.memory_space<vmem>>, vector<8x32xf32>
      %c0_18 = arith.constant 0 : index
      %c0_19 = arith.constant 0 : index
      %26 = vector.load %arg12[%c0_18, %c0_19] : memref<8x32xf32, #tpu.memory_space<vmem>>, vector<8x32xf32>
      %cst_20 = arith.constant 0.494974732 : f32
      %27 = vector.broadcast %cst_20 : f32 to vector<8x32xf32>
      %28 = arith.mulf %26, %27 : vector<8x32xf32>
      %29 = arith.addf %25, %28 : vector<8x32xf32>
      %c0_21 = arith.constant 0 : index
      %c0_22 = arith.constant 0 : index
      %c0_23 = arith.constant 0 : index
      %30 = vector.load %arg9[%c0_21, %c0_22, %c0_23] : memref<1x8x32xf32, #tpu.memory_space<vmem>>, vector<1x8x32xf32>
      %31 = vector.shape_cast %30 : vector<1x8x32xf32> to vector<8x32xf32>
      %32 = vector.shape_cast %29 : vector<8x32xf32> to vector<1x8x32xf32>
      tpu.vector_store %arg9[%c0_21, %c0_22, %c0_23], %32 {strides = array<i32>} : memref<1x8x32xf32, #tpu.memory_space<vmem>>, vector<1x8x32xf32>,
    } else {
    }
    return
  }
  func.func @transform_0(%arg0: i32, %arg1: i32) -> (i32, i32, i32) {
    %c0_i32 = arith.constant 0 : i32
    %c0_i32_0 = arith.constant 0 : i32
    %c0_i32_1 = arith.constant 0 : i32
    return %arg0, %c0_i32, %c0_i32_0 : i32, i32, i32
  }
  func.func @transform_1(%arg0: i32, %arg1: i32) -> (i32, i32, i32) {
    %c0_i32 = arith.constant 0 : i32
    %c0_i32_0 = arith.constant 0 : i32
    %c0_i32_1 = arith.constant 0 : i32
    return %arg0, %c0_i32, %c0_i32_0 : i32, i32, i32
  }
  func.func @transform_2(%arg0: i32, %arg1: i32) -> (i32, i32) {
    %c0_i32 = arith.constant 0 : i32
    %c0_i32_0 = arith.constant 0 : i32
    %c0_i32_1 = arith.constant 0 : i32
    return %c0_i32, %c0_i32_0 : i32, i32
  }
  func.func @transform_3(%arg0: i32, %arg1: i32) -> (i32, i32) {
    %c0_i32 = arith.constant 0 : i32
    %c0_i32_0 = arith.constant 0 : i32
    %c0_i32_1 = arith.constant 0 : i32
    return %c0_i32, %c0_i32_0 : i32, i32
  }
  func.func @transform_4(%arg0: i32, %arg1: i32) -> (i32, i32) {
    %c0_i32 = arith.constant 0 : i32
    %c0_i32_0 = arith.constant 0 : i32
    return %c0_i32, %arg1 : i32, i32
  }
  func.func @transform_5(%arg0: i32, %arg1: i32) -> (i32, i32) {
    %c0_i32 = arith.constant 0 : i32
    %c0_i32_0 = arith.constant 0 : i32
    return %c0_i32, %arg1 : i32, i32
  }
  func.func @transform_6(%arg0: i32, %arg1: i32) -> (i32, i32) {
    %c0_i32 = arith.constant 0 : i32
    %c0_i32_0 = arith.constant 0 : i32
    return %arg1, %c0_i32 : i32, i32
  }
  func.func @transform_7(%arg0: i32, %arg1: i32) -> (i32, i32, i32) {
    %c0_i32 = arith.constant 0 : i32
    %c0_i32_0 = arith.constant 0 : i32
    %c0_i32_1 = arith.constant 0 : i32
    return %arg0, %c0_i32, %c0_i32_0 : i32, i32, i32
  }
}

</mosaic_0001>

<bundles_post_ra>
// kernel: _decoder_layer_call.3
= control target key start
LH: loop header
LB: loop body
LE: loop exit
PB: predicated region body
PF: predicated region fallthrough
CT: control target
= control target key end

     0   :  { %s1549_s0 = inlined_call_operand.vmem [shape: bf16[2,8,32], index: 0, kind: input, shape index: {}]   ;;  %s1550_s1 = inlined_call_operand.vmem [shape: f32[2,8,32], index: 1, kind: input, shape index: {}]   ;;  %s1551_s2 = inlined_call_operand.vmem [shape: f32[1,32], index: 2, kind: input, shape index: {}]   ;;  %s1552_s3 = inlined_call_operand.vmem [shape: bf16[32,32], index: 3, kind: input, shape index: {}]   ;;  %s1553_s4 = inlined_call_operand.vmem [shape: bf16[32,256], index: 4, kind: input, shape index: {}]   ;;  %s1554_s5 = inlined_call_operand.vmem [shape: bf16[32,256], index: 5, kind: input, shape index: {}]   ;;  %s1555_s6 = inlined_call_operand.vmem [shape: bf16[256,32], index: 6, kind: input, shape index: {}]   ;;  %s1556_s7 = inlined_call_operand.hbm [shape: f32[2,8,32], index: 7, kind: output, shape index: {}]  }
   0x1   :  { %1565 = sst [smem:[#allocation19_spill]] %s1553_s4 }
   0x2   :  { %1566 = sst [smem:[#allocation20_spill]] %s1554_s5 }
   0x3   :  { %12 = vsyncpa [#allocation8], 0 }
   0x4   :  { %14 = vsyncpa [#allocation8 + $0x1], 0  ;;  %s1318_s24 = smov 0   ;;  %s1320_s25 = smov 0  }
   0x5   :  { %s1322_s26 = smov 0   ;;  %s1324_s27 = smov 0  }
   0x6   :  { %s1326_s28 = smov 0   ;;  %s1328_s29 = smov 0  }
   0x7   :  { %s1330_s30 = smov 0   ;;  %s1332_s8 = smov 0  }
   0x8   :  { %s1334_s9 = smov 0   ;;  %s1336_s10 = smov 0  }
   0x9 LB: > { %1567 = sst [smem:[#allocation10_spill]] %s1243_s26  ;;  %s947_s11 = sadd.s32 4294967295, %s1271_s10   ;;  %s1271_s10 = sphi %s1336_s10, %s20_s10   ;;  %s1267_s9 = sphi %s1334_s9, %s1590_s9   ;;  %s1263_s8 = sphi %s1332_s8, %s1593_s8   ;;  %s1259_s30 = sphi %s1330_s30, %s1588_s30   ;;  %s1255_s29 = sphi %s1328_s29, %s1587_s29   ;;  %s1251_s28 = sphi %s1326_s28, %s1586_s28   ;;  %s1247_s27 = sphi %s1324_s27, %s1585_s27   ;;  %s1243_s26 = sphi %s1322_s26, %s1584_s26   ;;  %s1239_s25 = sphi %s1320_s25, %s1592_s25   ;;  %s1235_s24 = sphi %s1318_s24, %s1591_s24  }
   0xa   : > { %1568 = sst [smem:[#allocation11_spill]] %s1251_s28  ;;  %s948_s12 = sadd.s32 4294967294, %s1271_s10  }
   0xb   : > { %1569 = sst [smem:[#allocation12_spill]] %s1263_s8  ;;  %s29_s13 = sadd.s32 1, %s1263_s8 }
   0xc   : > { %1570 = sst [smem:[#allocation13_spill]] %s1267_s9  ;;  %s32_s14 = sadd.s32 1, %s1267_s9 }
   0xd   : > { %p30_p0 = scmp.ge.s32.totalorder %s29_s13, 2  ;;  %s133_s15 = sadd.s32 1, %s1251_s28 }
   0xe   : > { %p140_p1 = scmp.ne.s32.totalorder %s1251_s28, %s1247_s27  ;;  %p141_p2 = scmp.eq.s32.totalorder %s1271_s10, 0 }
   0xf   : > { %s1595_s13 = smov (%p30_p0, %s29_s13), 0  ;;  %s1597_s14 = smov (!%p30_p0, %s32_s14), %s1267_s9 }
  0x10   : > { %1571 = sst [smem:[#allocation14_spill]] %s1595_s13  ;;  %s130_s16 = ssub.s32 %s1263_s8, %s1595_s13 }
  0x11   : > { %p1381_p3 = por %p141_p2, %p140_p1  ;;  %p34_p4 = scmp.ge.s32.totalorder %s1597_s14, 2 }
  0x12   : > { %p131_p5 = scmp.eq.s32.totalorder %s130_s16, 0  ;;  %s211_s18 = sadd.s32 1, %s1243_s26 }
  0x13   : > { %p221_p6 = scmp.ne.s32.totalorder %s1243_s26, %s1239_s25  ;;  %s1599_s14 = smov (%p34_p4, %s1597_s14), 0 }
  0x14   : > { %1573 = sst [smem:[#allocation15_spill]] %s1599_s14  ;;  %s208_s20 = ssub.s32 %s1267_s9, %s1599_s14 }
  0x15   : > { %s1391_s19 = scalar_select %p131_p5, %s1251_s28, %s133_s15  }
  0x16   : > { %p222_p7 = scmp.eq.s32.totalorder %s947_s11, 3  ;;  %p209_p8 = scmp.eq.s32.totalorder %s208_s20, 0 }
  0x17   : > { %1574 = sst [smem:[#allocation16_spill]] %s1391_s19  ;;  %p227_p9 = scmp.ne.s32.totalorder %s1239_s25, %s1235_s24 }
  0x18   : > { %p1397_p10 = por %p222_p7, %p221_p6  ;;  %p228_p11 = scmp.eq.s32.totalorder %s948_s12, 3 }
  0x19   : > { %s1402_s22 = scalar_select %p209_p8, %s1243_s26, %s211_s18  }
  0x1a   : > { %p1404_p12 = por %p228_p11, %p227_p9  ;;  %p950_p13 = scmp.ge.s32.totalorder %s1271_s10, 4 }
  0x1b   : > { %1576 = sst [smem:[#allocation17_spill]] %s1402_s22 }
  0x1c   : > { %s1577_s23 = scalar_select %p1404_p12, 1, 0 }
  0x1d   : > { %250 = sbr.rel (%p950_p13) target bundleno = 60 (0x3c), region = 24 }
  0x1e   : > { %1578 = sst [smem:[#allocation18_spill]] %s1577_s23 }
  0x24   : > { %267 = sbr.rel (!%p1381_p3) target bundleno = 48 (0x30), region = 36  ;;  %s269_s11 = sand.u32 (%p1381_p3), 1, %s1251_s28  }
  0x25   : > { %s952_s15 = sshll.u32 (%p1381_p3), %s1263_s8, 2  ;;  %s951_s16 = sshll.u32 (%p1381_p3), %s269_s11, 4 }
  0x26   : > { %s1579_s4 = sld [smem:[#allocation19_spill]] (%p1381_p3)  ;;  %s271_s18 = scalar_lea.vmem (%p1381_p3), [#allocation5], %s951_s16 }
  0x2c   : > { %s273_s12 = scalar_lea.vmem %s1579_s4, %s952_s15 }
  0x2d   : > { %v289_v0 = vld [vmem:[%s273_s12] sm:$0xf]  ;;  %v291_v1 = vld [vmem:[%s273_s12 + $0x8] sm:$0xf]  ;;  %v293_v2 = vld [vmem:[%s273_s12 + $0x10] sm:$0xf] }
  0x2e   : > { %290 = vst [vmem:[%s271_s18] sm:$0xf] %v289_v0  ;;  %292 = vst [vmem:[%s271_s18 + $0x4] sm:$0xf] %v291_v1  ;;  %v295_v3 = vld [vmem:[%s273_s12 + $0x18] sm:$0xf] }
  0x2f   : > { %294 = vst [vmem:[%s271_s18 + $0x8] sm:$0xf] %v293_v2  ;;  %296 = vst [vmem:[%s271_s18 + $0xc] sm:$0xf] %v295_v3 }
  0x30 PF: > { %327 = sbr.rel (!%p1381_p3) target bundleno = 60 (0x3c), region = 77  ;;  %s329_s11 = sand.u32 (%p1381_p3), 1, %s1251_s28  }
  0x31   : > { %s954_s13 = sshll.u32 (%p1381_p3), %s1263_s8, 2  ;;  %s953_s9 = sshll.u32 (%p1381_p3), %s329_s11, 4 }
  0x32   : > { %s1580_s5 = sld [smem:[#allocation20_spill]] (%p1381_p3)  ;;  %s331_s16 = scalar_lea.vmem (%p1381_p3), [#allocation6], %s953_s9 }
  0x38   : > { %s333_s20 = scalar_lea.vmem %s1580_s5, %s954_s13 }
  0x39   : > { %v349_v4 = vld [vmem:[%s333_s20] sm:$0xf]  ;;  %v351_v5 = vld [vmem:[%s333_s20 + $0x8] sm:$0xf]  ;;  %v353_v6 = vld [vmem:[%s333_s20 + $0x10] sm:$0xf] }
  0x3a   : > { %350 = vst [vmem:[%s331_s16] sm:$0xf] %v349_v4  ;;  %352 = vst [vmem:[%s331_s16 + $0x4] sm:$0xf] %v351_v5  ;;  %v355_v7 = vld [vmem:[%s333_s20 + $0x18] sm:$0xf] }
  0x3b   : > { %354 = vst [vmem:[%s331_s16 + $0x8] sm:$0xf] %v353_v6  ;;  %356 = vst [vmem:[%s331_s16 + $0xc] sm:$0xf] %v355_v7 }
  0x3c PF: > { %p955_p0 = scmp.ge.s32.totalorder %s1271_s10, 1  ;;  %p395_p1 = scmp.lt.s32.totalorder %s1271_s10, 5 }
  0x3e   : > { %p396_p2 = pnand %p955_p0, %p395_p1 }
  0x3f   : > { %s402_s9 = sand.u32 (!%p396_p2), 1, %s1247_s27   ;;  %s1561_s13 = sand.u32 (!%p396_p2), 1, %s1239_s25  }
  0x40   : > { %399 = sbr.rel (%p396_p2) target bundleno = 968 (0x3c8), region = 122  ;;  %s1427_s17 = sshll.u32 (!%p396_p2), %s402_s9, 4 }
  0x41   : > { %s1431_s12 = sshll.u32 (!%p396_p2), %s1561_s13, 3  ;;  %p457_p3 = scmp.lt.s32.totalorder (!%p396_p2), %s1259_s30, 1 }
  0x42   : > { %s961_s18 = sshll.u32 (!%p396_p2), %s1255_s29, 4  ;;  %s404_s22 = scalar_lea.vmem (!%p396_p2), [#allocation5], %s1427_s17 }
  0x43   : > { %p466_p4 = scmp.lt.s32.totalorder (!%p396_p2), %s961_s18, 31  ;;  %s411_s26 = scalar_lea.vmem (!%p396_p2), [#allocation6], %s1427_s17 }
  0x44   : > { %s456_s23 = scalar_lea.vmem (!%p396_p2), [#allocation7], %s1431_s12  ;;  %p963_p5 = scmp.ne.s32.totalorder (!%p396_p2), %s1255_s29, 0 }
  0x47   : > { %s458_s11 = scalar_select %p457_p3, %s1259_s30, 1 }
  0x48   : > { %s1601_s18 = smov (!%p466_p4, %s961_s18), 31  ;;  %475 = sbr.rel (%p963_p5) target bundleno = 463 (0x1cf), region = 134 }
  0x49   : > { %s959_s14 = sshll.u32 %s458_s11, 2  ;;  %s960_s15 = sshll.u32 %s458_s11, 3  ;;  %v1141_v8 = vld [vmem:[%s1552_s3] sm:$0xff] (!%p963_p5)   ;;  %v1273_v9 = vmov (!%p963_p5), 0.0   ;;  %v1142_v10 = vld [vmem:[%s1552_s3 + $0x8] sm:$0xff] (!%p963_p5)   ;;  %vm1274_vm0 = vmmov (!%p963_p5), 0  }
  0x4a   : > { %s460_s4 = scalar_lea.vmem %s1549_s0, %s959_s14  ;;  %s464_s9 = scalar_lea.vmem %s1550_s1, %s960_s15  ;;  %1006 = vmatprep.subr.bf16.mxu0 (!%p963_p5), %v1273_v9  ;;  %1010 = vmatprep.mubr.msk.bf16.mxu0 (!%p963_p5), %vm1274_vm0, %v1273_v9  ;;  %vm493_vm1 = vcmask (!%p963_p5), 261120   ;;  %v967_v25 = vld [vmem:[%s1551_s2] ss:$0 sm:$0xff] (!%p963_p5) }
  0x4b   : > { %s962_s8 = sshll.u32 %s1601_s18, 2  ;;  %1007 = vmatpush3.bf16.msra.mxu0 (!%p963_p5), %v1141_v8  ;;  %559 = vst.msk [vmem:[#allocation4] sm:$0xff] (!%p963_p5), %vm493_vm1, %v1273_v9  ;;  %v476_v11 = vld [vmem:[%s460_s4] sm:$0xf] (!%p963_p5) }
  0x4c   : > { %s1445_s28 = scalar_lea.vmem %s1555_s6, %s962_s8  ;;  %1008 = vmatprep.subr.bf16.mxu0 (!%p963_p5), %v1273_v9  ;;  %v537_v13 = vld [vmem:[%s464_s9] sm:$0xff] (!%p963_p5) }
  0x4f   : > { %1009 = vmatpush3.bf16.msra.mxu0 %v1142_v10 }
  0x52   : > { %1011 = vmatmul.mubr.msk.bf16.vlgmr.msra.gmra.mrb[0].mxu0 %vm493_vm1, %v476_v11 }
 0x125   : > { %v531_v12 = vpop.f32.mrb[0].mxu0 }
 0x126   : > { %v538_v14 = vmul.f32 0.49497473, %v531_v12  ;;  %v1012_v15 = vpop.f32.mrb[1].mxu0 }
 0x127   : > { %v534_v16 = vpop.f32.mrb[2].mxu0 }
 0x128   : > { %v539_v17 = vadd.f32 %v538_v14, %v537_v13  ;;  %v1013_v18 = vpop.f32.mrb[3].mxu0 }
 0x12a   : > { %540 = vst.msk [vmem:[#allocation2] sm:$0xff] %vm493_vm1, %v539_v17  ;;  %v541_v19 = vmul.f32 %v539_v17, %v539_v17 }
 0x12c   : > { %v542_v20 = vsel %vm493_vm1, %v541_v19, 0.0 }
 0x12d   : > { %543 = vadd.xlane.f32.xlu0 %v542_v20 }
 0x1ba   : > { %v544_v21 = vpop.xlane.xlu0 %543 }
 0x1bb   : > { %v546_v22 = vmul.f32 0.03125, %v544_v21 }
 0x1bd   : > { %v547_v23 = vadd.f32 1e-06, %v546_v22 }
 0x1bf   : > { %1143 = vrsqrt.f32 %v547_v23 }
 0x1c9   : > { %v1144_v24 = vpop.eup %1143 }
 0x1ca   : > { %v549_v26 = vmul.f32 %v1144_v24, %v539_v17 }
 0x1cc   : > { %v557_v27 = vmul.f32 %v967_v25, %v549_v26 }
 0x1ce   : > { %558 = vst.msk [vmem:[#allocation3] sm:$0xff] %vm493_vm1, %v557_v27 }
 0x1cf PF: > { %v1145_v28 = vld [vmem:[%s404_s22] sm:$0xff]   ;;  %v1275_v29 = vmov 0.0   ;;  %v1146_v30 = vld [vmem:[%s404_s22 + $0x8] sm:$0xff]   ;;  %vm1276_vm2 = vmmov 0   ;;  %vm578_vm3 = vcmask 261120   ;;  %p983_p6 = scmp.ne.s32.totalorder %s1255_s29, 1 }
 0x1d0   : > { %1014 = vmatprep.subr.bf16.mxu1 %v1275_v29  ;;  %1030 = vmatprep.subr.bf16.mxu0 %v1275_v29  ;;  %v1147_v32 = vld [vmem:[%s411_s26] sm:$0xff]   ;;  %v1148_v34 = vld [vmem:[%s411_s26 + $0x8] sm:$0xff]  }
 0x1d1   : > { %1015 = vmatpush3.bf16.msra.mxu1 %v1145_v28  ;;  %1018 = vmatprep.mubr.msk.bf16.mxu1 %vm1276_vm2, %v1275_v29  ;;  %v1149_v35 = vld [vmem:[%s1445_s28] sm:$0xff]   ;;  %v1150_v36 = vld [vmem:[%s1445_s28 + $0x8] sm:$0xff]   ;;  %v1151_v37 = vld [vmem:[%s1445_s28 + $0x10] sm:$0xff]  }
 0x1d2   : > { %1016 = vmatprep.subr.bf16.mxu1 %v1275_v29  ;;  %1046 = vmatprep.mubr.msk.bf16.mxu0 %vm1276_vm2, %v1275_v29  ;;  %v1152_v38 = vld [vmem:[%s1445_s28 + $0x18] sm:$0xff]   ;;  %v1153_v39 = vld [vmem:[%s1445_s28 + $0x20] sm:$0xff]   ;;  %v1154_v40 = vld [vmem:[%s1445_s28 + $0x28] sm:$0xff]  }
 0x1d3   : > { %1031 = vmatpush3.bf16.msra.mxu0 %v1149_v35  ;;  %v1155_v41 = vld [vmem:[%s1445_s28 + $0x30] sm:$0xff]   ;;  %v1156_v42 = vld [vmem:[%s1445_s28 + $0x38] sm:$0xff]   ;;  %v798_v0 = vld [vmem:[#allocation2] sm:$0xff] (!%p983_p6) }
 0x1d4   : > { %1032 = vmatprep.subr.bf16.mxu0 %v1275_v29  ;;  %v687_v58 = vld [vmem:[#allocation4] sm:$0xff] }
 0x1d5   : > { %v560_v31 = vld [vmem:[#allocation3] sm:$0xff]  ;;  %1017 = vmatpush3.bf16.msra.mxu1 %v1146_v30 }
 0x1d6   : > { %v561_v33 = vpack.c.bf16 %v560_v31, %v560_v31  ;;  %1022 = vmatprep.subr.bf16.mxu1 %v1275_v29 }
 0x1d7   : > { %1033 = vmatpush3.bf16.msra.mxu0 %v1150_v36 }
 0x1d8   : > { %1019 = vmatmul.mubr.msk.bf16.vlgmr.msra.gmra.mrb[0].mxu1 %vm578_vm3, %v561_v33  ;;  %1034 = vmatprep.subr.bf16.mxu0 %v1275_v29 }
 0x1d9   : > { %1023 = vmatpush3.bf16.msra.mxu1 %v1147_v32  ;;  %1026 = vmatprep.mubr.msk.bf16.mxu1 %vm1276_vm2, %v1275_v29 }
 0x1da   : > { %1024 = vmatprep.subr.bf16.mxu1 %v1275_v29 }
 0x1db   : > { %1035 = vmatpush3.bf16.msra.mxu0 %v1151_v37 }
 0x1dc   : > { %1036 = vmatprep.subr.bf16.mxu0 %v1275_v29 }
 0x1dd   : > { %1025 = vmatpush3.bf16.msra.mxu1 %v1148_v34 }
 0x1df   : > { %1037 = vmatpush3.bf16.msra.mxu0 %v1152_v38 }
 0x1e0   : > { %1027 = vmatmul.mubr.msk.bf16.vlgmr.msra.gmra.mrb[4].mxu1 %vm578_vm3, %v561_v33  ;;  %1038 = vmatprep.subr.bf16.mxu0 %v1275_v29 }
 0x1e3   : > { %1039 = vmatpush3.bf16.msra.mxu0 %v1153_v39 }
 0x1e4   : > { %1040 = vmatprep.subr.bf16.mxu0 %v1275_v29 }
 0x1e7   : > { %1041 = vmatpush3.bf16.msra.mxu0 %v1154_v40 }
 0x1e8   : > { %1042 = vmatprep.subr.bf16.mxu0 %v1275_v29 }
 0x1eb   : > { %1043 = vmatpush3.bf16.msra.mxu0 %v1155_v41 }
 0x1ec   : > { %1044 = vmatprep.subr.bf16.mxu0 %v1275_v29 }
 0x1ef   : > { %1045 = vmatpush3.bf16.msra.mxu0 %v1156_v42 }
 0x2ab   : > { %v616_v43 = vpop.f32.mrb[0].mxu1 }
 0x2ac   : > { %v974_v44 = vmul.f32 -1.442695, %v616_v43  ;;  %v1020_v45 = vpop.f32.mrb[1].mxu1 }
 0x2ad   : > { %v619_v46 = vpop.f32.mrb[2].mxu1 }
 0x2ae   : > { %1157 = vpow2.f32 %v974_v44  ;;  %v1021_v47 = vpop.f32.mrb[3].mxu1 }
 0x2b3   : > { %v672_v48 = vpop.f32.mrb[4].mxu1 }
 0x2b4   : > { %v1028_v49 = vpop.f32.mrb[5].mxu1 }
 0x2b5   : > { %v675_v50 = vpop.f32.mrb[6].mxu1 }
 0x2b6   : > { %v1029_v51 = vpop.f32.mrb[7].mxu1 }
 0x2b8   : > { %v1158_v52 = vpop.eup %1157 }
 0x2b9   : > { %v681_v53 = vadd.f32 1.0, %v1158_v52 }
 0x2bb   : > { %1159 = vrcp.f32 %v681_v53 }
 0x2c5   : > { %v1160_v54 = vpop.eup %1159 }
 0x2c6   : > { %v684_v55 = vmul.f32 %v1160_v54, %v616_v43 }
 0x2c8   : > { %v685_v56 = vmul.f32 %v684_v55, %v672_v48 }
 0x2ca   : > { %v686_v57 = vpack.c.bf16 %v685_v56, %v685_v56 }
 0x2cc   : > { %1047 = vmatmul.mubr.bf16.vlgmr.msra.gmra.mrb[0].mxu0 %v686_v57 }
 0x39c   : > { %797 = sbr.rel (%p983_p6) target bundleno = 943 (0x3af), region = 138 }
 0x39f   : > { %v786_v59 = vpop.f32.mrb[0].mxu0 }
 0x3a0   : > { %v792_v60 = vadd.f32 %v786_v59, %v687_v58  ;;  %v1048_v61 = vpop.f32.mrb[1].mxu0 }
 0x3a1   : > { %v789_v62 = vpop.f32.mrb[2].mxu0 }
 0x3a2   : > { %793 = vst.msk [vmem:[#allocation4] sm:$0xff] %vm578_vm3, %v792_v60  ;;  %v1049_v63 = vpop.f32.mrb[3].mxu0 }
 0x3a9   : > { %v799_v1 = vld [vmem:[#allocation4] sm:$0xff] }
 0x3aa   : > { %v800_v2 = vmul.f32 0.49497473, %v799_v1 }
 0x3ac   : > { %v801_v3 = vadd.f32 %v800_v2, %v798_v0 }
 0x3ae   : > { %802 = vst.msk [vmem:[%s456_s23] sm:$0xff] %vm578_vm3, %v801_v3 }
 0x3af PF: > { %s985_s26 = sshll.u32 %s1259_s30, 7  ;;  %s817_s29 = sshll.u32 %s456_s23, 4  ;;  %s818_s29 = int_to_ptr.vmem [resolvable:$true] %s817_s29 }
 0x3b0   : > { %s1492_s22 = scalar_lea.hbm %s1556_s7, %s985_s26  ;;  %s1581_s13 = sand.u32 1, %s1239_s25  }
 0x3b1   : > { %s804_s17 = scalar_lea.sflag [#allocation8], %s1581_s13  ;;  %s1161_s14 = scalar_lea.vmem %s818_s29, 128 }
 0x3b2   : > { %p1162_p7 = scmp.ne.s32.totalorder %s818_s29, %s1161_s14  ;;  %s1277_s15 = smov [#allocation7]  }
 0x3b3   : > { %s1165_s16 = sshll.u32 %s1277_s15, 4  ;;  %s1166_s16 = int_to_ptr.vmem [resolvable:$false] %s1165_s16 }
 0x3b4   : > { %p1163_p8 = pnand %p1162_p7, %p1397_p10  ;;  %s1167_s27 = scalar_lea.vmem %s1166_s16, 256 }
 0x3b5   : > { %p1168_p11 = scmp.lt.s32.totalorder %s818_s29, %s1166_s16  ;;  %p1169_p13 = scmp.lt.s32.totalorder %s1167_s27, %s1161_s14 }
 0x3b6   : > { %p1164_p9 = pneg %p1163_p8 }
 0x3b7   : > { %p1170_p0 = por %p1169_p13, %p1168_p11 }
 0x3b9   : > { %p1171_p1 = pnand %p1170_p0, %p1164_p9 }
 0x3bb   : > { %1174 = shalt.err (!%p1171_p1)
}
 0x3bc   : > { %s1175_s30 = scalar_lea.hbm %s1492_s22, 128  ;;  %s1179_s9 = scalar_lea.hbm %s1556_s7, 256 }
 0x3bd   : > { %p1176_p2 = scmp.ne.s32.totalorder %s1492_s22, %s1175_s30  ;;  %p1180_p5 = scmp.lt.u32.totalorder %s1492_s22, %s1556_s7 }
 0x3be   : > { %p1181_p6 = scmp.lt.u32.totalorder %s1179_s9, %s1175_s30  ;;  %p1183_p8 = scmp.lt.u32.totalorder %s1175_s30, %s1492_s22 }
 0x3bf   : > { %p1177_p3 = pnand %p1176_p2, %p1397_p10 }
 0x3c0   : > { %p1182_p7 = por %p1181_p6, %p1180_p5 }
 0x3c1   : > { %p1178_p4 = pneg %p1177_p3 }
 0x3c2   : > { %p1184_p9 = por %p1183_p8, %p1182_p7 }
 0x3c4   : > { %p1185_p11 = pnand %p1184_p9, %p1178_p4 }
 0x3c6   : > { %1188 = shalt.err (!%p1185_p11)
}
 0x3c7   : > { %1050 = dma.vmem_to_hbm [thread:$0]  (%p1397_p10), %s818_s29, 128, %s1492_s22, %s804_s17  }
 0x3c8 PF: > { %p1056_p13 = scmp.ge.s32.totalorder %s1271_s10, 2  ;;  %s829_s18 = sand.u32 1, %s1235_s24  }
 0x3c9   : > { %s830_s4 = scalar_lea.sflag [#allocation8], %s829_s18 }
 0x3ca   : > { %p1053_p0 = pnand %p1056_p13, %p1404_p12 }
 0x3cc   : > { %1230 = dma.done.wait (!%p1053_p0), %s830_s4, 128  }
 0x3cd   : > { %1232 = vsyncadd (!%p1053_p0), %s830_s4, 4294967168  ;;  %s20_s10 = sadd.s32 1, %s1271_s10   ;;  %s1583_s8 = sld [smem:[#allocation10_spill]] }
 0x3ce   : > { %p17_p1 = scmp.ge.s32.totalorder %s20_s10, 6   ;;  %s1584_s26 = sld [smem:[#allocation17_spill]] }
 0x3cf   : > { %s1585_s27 = sld [smem:[#allocation11_spill]]  ;;  %s1586_s28 = sld [smem:[#allocation16_spill]] }
 0x3d0   : > { %s1587_s29 = sld [smem:[#allocation12_spill]]  ;;  %s1588_s30 = sld [smem:[#allocation13_spill]] }
 0x3d1   : > { %s1589_s21 = sld [smem:[#allocation14_spill]]  ;;  %s1590_s9 = sld [smem:[#allocation15_spill]] }
 0x3d2   : > { %s1591_s24 = smov %s1239_s25  ;;  %19 = sbr.rel (!%p17_p1) target bundleno = 9 (0x9), region = 195 }
 0x3d3   : > { %s1592_s25 = smov %s1583_s8 }
 0x3d7   : > { %s1593_s8 = smov %s1589_s21 }
 0x3d9   :  { %835 = vsyncpa [#allocation8], 1 }
 0x3da   :  { %837 = vsyncpa [#allocation8 + $0x1], 1 }

// kernel: _decoder_layer_call.2
= control target key start
LH: loop header
LB: loop body
LE: loop exit
PB: predicated region body
PF: predicated region fallthrough
CT: control target
= control target key end

     0   :  { %s1104_s24 = smov 0   ;;  %s1106_s25 = smov 0   ;;  %s1209_s0 = inlined_call_operand.vmem [shape: f32[2,8,32], index: 0, kind: input, shape index: {}]   ;;  %s1210_s1 = inlined_call_operand.vmem [shape: f32[1,32], index: 1, kind: input, shape index: {}]   ;;  %s1211_s2 = inlined_call_operand.vmem [shape: f32[2,8,4], index: 2, kind: input, shape index: {}]   ;;  %s1212_s3 = inlined_call_operand.vmem [shape: f32[2,8,4], index: 3, kind: input, shape index: {}]   ;;  %s1213_s4 = inlined_call_operand.vmem [shape: bf16[4,32,8], index: 4, kind: input, shape index: {}]   ;;  %s1214_s5 = inlined_call_operand.vmem [shape: bf16[4,32,8], index: 5, kind: input, shape index: {}]   ;;  %s1215_s6 = inlined_call_operand.vmem [shape: bf16[4,32,8], index: 6, kind: input, shape index: {}]   ;;  %s1216_s7 = inlined_call_operand.vmem [shape: bf16[2,4,8,8], index: 7, kind: output, shape index: {}]  }
   0x1   :  { %s1108_s26 = smov 0   ;;  %s1110_s27 = smov 0  }
   0x2   :  { %s1112_s28 = smov 0  }
   0x3 LB: > { %s26_s29 = sadd.s32 1, %s1050_s26  ;;  %s29_s30 = sadd.s32 1, %s1054_s27  ;;  %s1058_s28 = sphi %s1112_s28, %s17_s28   ;;  %s1054_s27 = sphi %s1110_s27, %s1220_s27   ;;  %s1050_s26 = sphi %s1108_s26, %s1219_s26   ;;  %s1046_s25 = sphi %s1106_s25, %s1218_s25   ;;  %s1042_s24 = sphi %s1104_s24, %s1217_s24  }
   0x4   : > { %p27_p0 = scmp.ge.s32.totalorder %s26_s29, 4  ;;  %p886_p1 = scmp.ge.s32.totalorder %s1058_s28, 1 }
   0x5   : > { %p298_p2 = scmp.lt.s32.totalorder %s1058_s28, 9 }
   0x6   : > { %s1222_s29 = smov (%p27_p0, %s26_s29), 0  ;;  %s1224_s30 = smov (!%p27_p0, %s29_s30), %s1054_s27 }
   0x7   : > { %p299_p3 = pnand %p886_p1, %p298_p2  ;;  %p31_p4 = scmp.ge.s32.totalorder %s1224_s30, 2 }
   0x8   : > { %p355_p5 = scmp.lt.s32.totalorder (!%p299_p3), %s1046_s25, 1  ;;  %vm393_vm0 = vcmask (!%p299_p3), 261120   ;;  %p367_p6 = scmp.lt.s32.totalorder (!%p299_p3), %s1042_s24, 3  ;;  %v1060_v3 = vmov (!%p299_p3), 0.0   ;;  %vm1061_vm1 = vmmov (!%p299_p3), 0   ;;  %vm695_vm2 = vcmask (!%p299_p3), 1043456  }
   0x9   : > { %s1226_s30 = smov (%p31_p4, %s1224_s30), 0  ;;  %302 = sbr.rel (%p299_p3) target bundleno = 1278 (0x4fe), region = 48 }
   0xa   : > { %928 = vmatprep.subr.bf16.mxu0 (!%p299_p3), %v1060_v3  ;;  %936 = vmatprep.subr.bf16.mxu1 (!%p299_p3), %v1060_v3  ;;  %s1062_s14 = smov (!%p299_p3), 4   ;;  %v898_v14 = vld [vmem:[%s1210_s1] ss:$0 sm:$0xff] (!%p299_p3)  ;;  %vm606_vm3 = vcmask (!%p299_p3), 31744   ;;  %vm626_vm4 = vcmask (!%p299_p3), 64512   ;;  %v673_v58 = vlaneseq (!%p299_p3)  ;;  %vm740_vm6 = vcmask (!%p299_p3), 60416  }
   0xb   : > { %932 = vmatprep.mubr.msk.bf16.mxu0 (!%p299_p3), %vm1061_vm1, %v1060_v3  ;;  %940 = vmatprep.mubr.msk.bf16.mxu1 (!%p299_p3), %vm1061_vm1, %v1060_v3 }
   0xc   : > { %v674_v59 = vshrl.u32 (!%p299_p3), %v673_v58, 7  ;;  %v676_v60 = vand.u32 (!%p299_p3), 127, %v673_v58 }
   0xe   : > { %vm677_vm5 = vcmp.ge.s32.totalorder (!%p299_p3), %v674_v59, %v676_v60 }
  0x10   : > { %s1228_s25 = smov (!%p355_p5, %s1046_s25), 1  ;;  %s1230_s24 = smov (!%p367_p6, %s1042_s24), 3 }
  0x11   : > { %s1137_s8 = sshll.u32 %s1228_s25, 3  ;;  %s912_s12 = sshll.u32 %s1230_s24, 4 }
  0x12   : > { %s358_s11 = scalar_lea.vmem %s1209_s0, %s1137_s8  ;;  %s371_s15 = scalar_lea.vmem %s1213_s4, %s912_s12 }
  0x13   : > { %v391_v0 = vld [vmem:[%s358_s11] sm:$0xff]  ;;  %s376_s18 = scalar_lea.vmem %s1214_s5, %s912_s12  ;;  %v1010_v6 = vld [vmem:[%s371_s15 + $0x8] sm:$0xff]   ;;  %s381_s21 = scalar_lea.vmem %s1215_s6, %s912_s12 }
  0x14   : > { %v392_v1 = vmul.f32 %v391_v0, %v391_v0  ;;  %v1008_v4 = vld [vmem:[%s371_s15] sm:$0xff]   ;;  %v1011_v7 = vld [vmem:[%s376_s18 + $0x8] sm:$0xff]   ;;  %s362_s9 = scalar_lea.vmem %s1211_s2, %s1137_s8  ;;  %s366_s13 = scalar_lea.vmem %s1212_s3, %s1137_s8 }
  0x15   : > { %v1009_v5 = vld [vmem:[%s376_s18] sm:$0xff]   ;;  %929 = vmatpush3.bf16.msra.mxu0 %v1008_v4  ;;  %v1013_v19 = vld [vmem:[%s381_s21 + $0x8] sm:$0xff]   ;;  %s1063_s8 = smov 124   ;;  %s896_s16 = sshll.u32 %s1228_s25, 2 }
  0x16   : > { %v394_v2 = vsel %vm393_vm0, %v392_v1, 0.0  ;;  %937 = vmatpush3.bf16.msra.mxu1 %v1009_v5  ;;  %930 = vmatprep.subr.bf16.mxu0 %v1060_v3  ;;  %v1162_v8 = vld [vmem:[%s362_s9] sm:$0xff]  ;;  %s387_s17 = sadd.s32 %s896_s16, %s1230_s24 }
  0x17   : > { %395 = vadd.xlane.f32.xlu0 %v394_v2  ;;  %938 = vmatprep.subr.bf16.mxu1 %v1060_v3  ;;  %v583_v9 = vld [vmem:[%s366_s13] sm:$0xff]  ;;  %s897_s18 = sshll.u32 %s387_s17, 2 }
  0x18   : > { %596 = vrot.lane.b32.xlu1 %v1162_v8, %s1062_s14  ;;  %v1012_v17 = vld [vmem:[%s381_s21] sm:$0xff]   ;;  %s389_s21 = scalar_lea.vmem %s1216_s7, %s897_s18 }
  0x19   : > { %931 = vmatpush3.bf16.msra.mxu0 %v1010_v6 }
  0x1a   : > { %939 = vmatpush3.bf16.msra.mxu1 %v1011_v7  ;;  %944 = vmatprep.subr.bf16.mxu0 %v1060_v3 }
  0x1b   : > { %952 = vmatprep.subr.bf16.mxu1 %v1060_v3 }
  0x2d   : > { %586 = vrot.lane.b32.xlu0 %v583_v9, %s1062_s14 }
  0x8a   : > { %v597_v39 = vpop.permute.xlu1 %596 }
  0xa4   : > { %v396_v10 = vpop.xlane.xlu0 %395 }
  0xa5   : > { %v398_v11 = vmul.f32 0.03125, %v396_v10 }
  0xa7   : > { %v399_v12 = vadd.f32 1e-06, %v398_v11 }
  0xa8   : > { %v587_v20 = vpop.permute.xlu0 %586 }
  0xa9   : > { %1014 = vrsqrt.f32 %v399_v12 }
  0xb3   : > { %v1015_v13 = vpop.eup %1014 }
  0xb4   : > { %v401_v15 = vmul.f32 %v1015_v13, %v391_v0 }
  0xb6   : > { %v409_v16 = vmul.f32 %v898_v14, %v401_v15 }
  0xb8   : > { %v410_v18 = vpack.c.bf16 %v409_v16, %v409_v16 }
  0xba   : > { %933 = vmatmul.mubr.msk.bf16.vlgmr.msra.gmra.mrb[0].mxu0 %vm393_vm0, %v410_v18  ;;  %941 = vmatmul.mubr.msk.bf16.vlgmr.msra.gmra.mrb[0].mxu1 %vm393_vm0, %v410_v18 }
  0xbb   : > { %945 = vmatpush3.bf16.msra.mxu0 %v1012_v17  ;;  %948 = vmatprep.mubr.msk.bf16.mxu0 %vm1061_vm1, %v1060_v3 }
  0xbc   : > { %946 = vmatprep.subr.bf16.mxu0 %v1060_v3  ;;  %954 = vmatprep.mubr.msk.bf16.mxu1 %vm1061_vm1, %v1060_v3 }
  0xbf   : > { %947 = vmatpush3.bf16.msra.mxu0 %v1013_v19 }
  0xc0   : > { %958 = vmatprep.subr.bf16.mxu0 %v1060_v3 }
  0xc2   : > { %949 = vmatmul.mubr.msk.bf16.vlgmr.msra.gmra.mrb[4].mxu0 %vm393_vm0, %v410_v18 }
  0xc3   : > { %960 = vmatprep.mubr.msk.bf16.mxu0 %vm1061_vm1, %v1060_v3 }
 0x18d   : > { %v464_v21 = vpop.f32.mrb[0].mxu0  ;;  %v520_v22 = vpop.f32.mrb[0].mxu1 }
 0x18e   : > { %v611_v23 = vmul.f32 %v587_v20, %v520_v22  ;;  %v934_v24 = vpop.f32.mrb[1].mxu0  ;;  %v942_v25 = vpop.f32.mrb[1].mxu1  ;;  %v618_v30 = vmul.f32 %v583_v9, %v520_v22  ;;  %v589_v32 = vmul.f32 %v587_v20, %v464_v21  ;;  %v600_v38 = vmul.f32 %v583_v9, %v464_v21 }
 0x18f   : > { %v467_v26 = vpop.f32.mrb[2].mxu0  ;;  %v523_v27 = vpop.f32.mrb[2].mxu1  ;;  %v610_v41 = vmul.f32 %v1162_v8, %v520_v22  ;;  %v617_v42 = vmul.f32 %v597_v39, %v520_v22  ;;  %v584_v50 = vmul.f32 %v1162_v8, %v464_v21  ;;  %v599_v51 = vmul.f32 %v597_v39, %v464_v21 }
 0x190   : > { %v935_v28 = vpop.f32.mrb[3].mxu0  ;;  %v943_v29 = vpop.f32.mrb[3].mxu1  ;;  %613 = vrot.lane.b32.xlu1 %v611_v23, %s1063_s8 }
 0x194   : > { %620 = vrot.lane.b32.xlu1 %v618_v30, %s1062_s14 }
 0x195   : > { %v576_v31 = vpop.f32.mrb[4].mxu0 }
 0x196   : > { %v691_v33 = vpack.c.bf16 %v576_v31, %v576_v31  ;;  %v950_v34 = vpop.f32.mrb[5].mxu0 }
 0x197   : > { %v579_v35 = vpop.f32.mrb[6].mxu0 }
 0x198   : > { %v697_v36 = vsel %vm695_vm2, %v691_v33, 0  ;;  %v951_v37 = vpop.f32.mrb[7].mxu0  ;;  %591 = vrot.lane.b32.xlu1 %v589_v32, %s1063_s8 }
 0x199   : > { %959 = vmatpush3.bf16.msra.mxu0 %v697_v36 }
 0x19c   : > { %602 = vrot.lane.b32.xlu1 %v600_v38, %s1062_s14 }
 0x202   : > { %v614_v40 = vpop.permute.xlu1 %613 }
 0x203   : > { %v616_v44 = vsub.f32 %v610_v41, %v614_v40 }
 0x206   : > { %v621_v43 = vpop.permute.xlu1 %620 }
 0x207   : > { %v623_v45 = vadd.f32 %v621_v43, %v617_v42 }
 0x209   : > { %v624_v46 = vsel %vm606_vm3, %v616_v44, %v623_v45 }
 0x20a   : > { %v625_v47 = vpack.c.bf16 %v624_v46, %v624_v46  ;;  %v592_v48 = vpop.permute.xlu1 %591 }
 0x20b   : > { %v594_v53 = vsub.f32 %v584_v50, %v592_v48 }
 0x20c   : > { %v631_v49 = vsel %vm626_vm4, %v625_v47, 0 }
 0x20d   : > { %953 = vmatpush3.bf16.xpose.msra.mxu1 %v631_v49 }
 0x20e   : > { %v603_v52 = vpop.permute.xlu1 %602 }
 0x20f   : > { %v605_v54 = vadd.f32 %v603_v52, %v599_v51 }
 0x211   : > { %v607_v55 = vsel %vm606_vm3, %v594_v53, %v605_v54 }
 0x212   : > { %v608_v56 = vmul.f32 0.35355338, %v607_v55 }
 0x214   : > { %v609_v57 = vpack.c.bf16 %v608_v56, %v608_v56 }
 0x216   : > { %955 = vmatmul.mubr.msk.bf16.vlgmr.msra.gmra.mrb[4].mxu1 %vm626_vm4, %v609_v57 }
 0x2e9   : > { %v667_v61 = vpop.f32.mrb[4].mxu1 }
 0x2ea   : > { %v678_v62 = vsel %vm677_vm5, %v667_v61, -3.4028235e+38  ;;  %v956_v63 = vpop.f32.mrb[5].mxu1 }
 0x2eb   : > { %v670_v0 = vpop.f32.mrb[6].mxu1  ;;  %v679_v1 = vsel %vm626_vm4, %v678_v62, -inf }
 0x2ec   : > { %680 = vmax.xlane.f32.xlu1 %v679_v1  ;;  %v957_v2 = vpop.f32.mrb[7].mxu1 }
 0x379   : > { %v681_v3 = vpop.xlane.xlu1 %680 }
 0x37a   : > { %v682_v4 = vsub.f32 %v678_v62, %v681_v3 }
 0x37c   : > { %v683_v5 = vmul.f32 1.442695, %v682_v4 }
 0x37e   : > { %1016 = vpow2.f32 %v683_v5 }
 0x388   : > { %v1017_v6 = vpop.eup %1016 }
 0x389   : > { %v685_v7 = vsel %vm626_vm4, %v1017_v6, 0.0 }
 0x38a   : > { %686 = vadd.xlane.f32.xlu0 %v685_v7 }
 0x417   : > { %v687_v8 = vpop.xlane.xlu0 %686 }
 0x418   : > { %1018 = vrcp.f32 %v687_v8 }
 0x422   : > { %v1019_v9 = vpop.eup %1018 }
 0x423   : > { %v689_v10 = vmul.f32 %v1019_v9, %v1017_v6 }
 0x425   : > { %v690_v11 = vpack.c.bf16 %v689_v10, %v689_v10 }
 0x427   : > { %961 = vmatmul.mubr.msk.bf16.vlgmr.msra.gmra.mrb[8].mxu0 %vm626_vm4, %v690_v11 }
 0x4fa   : > { %v733_v12 = vpop.f32.mrb[8].mxu0 }
 0x4fb   : > { %v739_v13 = vpack.c.bf16 %v733_v12, %v733_v12  ;;  %v962_v14 = vpop.f32.mrb[9].mxu0 }
 0x4fc   : > { %v736_v15 = vpop.f32.mrb[10].mxu0 }
 0x4fd   : > { %741 = vst.msk [vmem:[%s389_s21] sm:$0xf] %vm740_vm6, %v739_v13  ;;  %v963_v16 = vpop.f32.mrb[11].mxu0 }
 0x4fe PF: > { %s17_s28 = sadd.s32 1, %s1058_s28   ;;  %s1217_s24 = smov %s1050_s26 }
 0x4ff   : > { %p14_p7 = scmp.ge.s32.totalorder %s17_s28, 10   ;;  %s1218_s25 = smov %s1054_s27 }
 0x500   : > { %s1219_s26 = smov %s1222_s29  ;;  %s1220_s27 = smov %s1226_s30 }
 0x501   :  { %16 = sbr.rel (!%p14_p7) target bundleno = 3 (0x3), region = 93 }

</bundles_post_ra>
